<compile_context>
chip_gen: v5e
topology: v5e:2x2
jax: 0.10.0
libtpu: 0.0.40
codegen_flags: <defaults>
</compile_context>

<pallas_src>
import functools

import jax
import jax.numpy as jnp
from jax import lax
from jax.experimental import pallas as pl
from jax.experimental.pallas import tpu as pltpu

BN_EPS = 1e-5


def _round_up(x, m):
    return (x + m - 1) // m * m


# --------------------------- feature probe -----------------------------------

def _probe_buffered():
    """Check whether BlockSpec(pipeline_mode=pl.Buffered(n)) lowers on this jax."""
    try:
        def _k(x_ref, o_ref):
            o_ref[...] = x_ref[...] + 1.0

        spec_in = pl.BlockSpec((8, 128), lambda i: (i, 0),
                               pipeline_mode=pl.Buffered(3))
        f = pl.pallas_call(
            _k,
            out_shape=jax.ShapeDtypeStruct((32, 128), jnp.float32),
            grid=(4,),
            in_specs=[spec_in],
            out_specs=pl.BlockSpec((8, 128), lambda i: (i, 0)))
        jax.block_until_ready(f(jnp.zeros((32, 128), jnp.float32)))
        return True
    except Exception:
        return False


_HAS_BUFFERED = _probe_buffered()


# --------------------------- tile selection -----------------------------------

def _pick_tk(kp):
    # Prefer large, 256-multiple K tiles (whole MXU pushes on v6e/v7x).
    for cand in (1024, 768, 512, 384, 256, 128):
        if kp % cand == 0:
            return cand
    return 128


def _pick_tn(np_):
    # Wide N tiles, but keep >= 2 parallel N blocks where possible (v7x 2 TCs).
    if np_ <= 128:
        return np_
    for cand in (512, 384, 256, 128):
        if cand <= np_ // 2 and np_ % cand == 0:
            return cand
    return 128 if np_ % 128 == 0 else np_


# --------------------------- fused matmul kernels -----------------------------

def _mm_stats_kernel(a_ref, b_ref, o_ref, sum_ref, ssq_ref, acc_ref):
    """y = a @ b; also emits per-column sum / sum-of-squares of y."""
    k = pl.program_id(1)

    @pl.when(k == 0)
    def _():
        acc_ref[...] = jnp.zeros_like(acc_ref)

    acc_ref[...] += jnp.dot(a_ref[...], b_ref[...],
                            preferred_element_type=jnp.float32)

    @pl.when(k == pl.num_programs(1) - 1)
    def _():
        y = acc_ref[...]
        o_ref[...] = y.astype(o_ref.dtype)
        sum_ref[...] = jnp.sum(y, axis=0, keepdims=True)
        ssq_ref[...] = jnp.sum(y * y, axis=0, keepdims=True)


def _mm_bn_stats_kernel(scale_ref, shift_ref, a_ref, b_ref,
                        o_ref, sum_ref, ssq_ref, acc_ref, *, m_valid, tm):
    """Same as above, plus a fused BN+ReLU prologue on the A tile."""
    k = pl.program_id(1)

    @pl.when(k == 0)
    def _():
        acc_ref[...] = jnp.zeros_like(acc_ref)

    a = a_ref[...].astype(jnp.float32)
    a = jnp.maximum(a * scale_ref[...] + shift_ref[...], 0.0)
    if m_valid < tm:                      # keep zero-padded rows exactly zero
        rows = lax.broadcasted_iota(jnp.int32, a.shape, 0)
        a = jnp.where(rows < m_valid, a, 0.0)
    acc_ref[...] += jnp.dot(a.astype(jnp.bfloat16), b_ref[...],
                            preferred_element_type=jnp.float32)

    @pl.when(k == pl.num_programs(1) - 1)
    def _():
        y = acc_ref[...]
        o_ref[...] = y.astype(o_ref.dtype)
        sum_ref[...] = jnp.sum(y, axis=0, keepdims=True)
        ssq_ref[...] = jnp.sum(y * y, axis=0, keepdims=True)


def _mm_kernel(a_ref, b_ref, o_ref, acc_ref):
    """Plain matmul (FC head), f32 output."""
    k = pl.program_id(1)

    @pl.when(k == 0)
    def _():
        acc_ref[...] = jnp.zeros_like(acc_ref)

    acc_ref[...] += jnp.dot(a_ref[...], b_ref[...],
                            preferred_element_type=jnp.float32)

    @pl.when(k == pl.num_programs(1) - 1)
    def _():
        o_ref[...] = acc_ref[...]


def _conv_mm(a, w_packed, m_true, scale=None, shift=None):
    """(rows, K) @ pre-packed (Kp, Np) bf16 weights.

    Returns (y bf16 (Mp, Np), sum (1, Np) f32, ssq (1, Np) f32).
    If scale/shift are given, relu(a*scale+shift) is applied to A in-kernel.
    """
    m0, k0 = a.shape
    kp, np_ = w_packed.shape
    mp = max(_round_up(m_true, 16), 16)
    a = a.astype(jnp.bfloat16)
    if (m0, k0) != (mp, kp):
        a = jnp.pad(a, ((0, mp - m0), (0, kp - k0)))

    tk = _pick_tk(kp)
    tn = _pick_tn(np_)
    ksteps = kp // tk

    if _HAS_BUFFERED and ksteps >= 3:
        b_spec = pl.BlockSpec((tk, tn), lambda j, k: (k, j),
                              pipeline_mode=pl.Buffered(3))
    else:
        b_spec = pl.BlockSpec((tk, tn), lambda j, k: (k, j))
    a_spec = pl.BlockSpec((mp, tk), lambda j, k: (0, k))
    vec_k_spec = pl.BlockSpec((1, tk), lambda j, k: (0, k))
    o_spec = pl.BlockSpec((mp, tn), lambda j, k: (0, j))
    vec_n_spec = pl.BlockSpec((1, tn), lambda j, k: (0, j))

    out_shape = (jax.ShapeDtypeStruct((mp, np_), jnp.bfloat16),
                 jax.ShapeDtypeStruct((1, np_), jnp.float32),
                 jax.ShapeDtypeStruct((1, np_), jnp.float32))
    scratch = [pltpu.VMEM((mp, tn), jnp.float32)]
    cparams = pltpu.CompilerParams(
        dimension_semantics=("parallel", "arbitrary"))

    if scale is None:
        return pl.pallas_call(
            _mm_stats_kernel,
            out_shape=out_shape,
            grid_spec=pltpu.PrefetchScalarGridSpec(
                num_scalar_prefetch=0,
                grid=(np_ // tn, ksteps),
                in_specs=[a_spec, b_spec],
                out_specs=(o_spec, vec_n_spec, vec_n_spec),
                scratch_shapes=scratch),
            compiler_params=cparams,
        )(a, w_packed)

    kern = functools.partial(_mm_bn_stats_kernel, m_valid=m_true, tm=mp)
    return pl.pallas_call(
        kern,
        out_shape=out_shape,
        grid_spec=pltpu.PrefetchScalarGridSpec(
            num_scalar_prefetch=0,
            grid=(np_ // tn, ksteps),
            in_specs=[vec_k_spec, vec_k_spec, a_spec, b_spec],
            out_specs=(o_spec, vec_n_spec, vec_n_spec),
            scratch_shapes=scratch),
        compiler_params=cparams,
    )(scale, shift, a, w_packed)


def _plain_mm(a, b):
    mp, kp0 = a.shape
    kp, np_ = b.shape
    a = a.astype(jnp.bfloat16)
    if kp0 != kp:
        a = jnp.pad(a, ((0, 0), (0, kp - kp0)))
    tk = _pick_tk(kp)
    tn = _pick_tn(np_)
    return pl.pallas_call(
        _mm_kernel,
        out_shape=jax.ShapeDtypeStruct((mp, np_), jnp.float32),
        grid_spec=pltpu.PrefetchScalarGridSpec(
            num_scalar_prefetch=0,
            grid=(np_ // tn, kp // tk),
            in_specs=[pl.BlockSpec((mp, tk), lambda j, k: (0, k)),
                      pl.BlockSpec((tk, tn), lambda j, k: (k, j))],
            out_specs=pl.BlockSpec((mp, tn), lambda j, k: (0, j)),
            scratch_shapes=[pltpu.VMEM((mp, tn), jnp.float32)]),
        compiler_params=pltpu.CompilerParams(
            dimension_semantics=("parallel", "arbitrary")),
    )(a, b.astype(jnp.bfloat16))


# --------------------------- residual BN-apply kernels ------------------------

def _bn_res_apply_kernel(y_ref, s_ref, sh_ref, r_ref, o_ref, *, m_valid):
    y = y_ref[...].astype(jnp.float32) * s_ref[...] + sh_ref[...]
    y = jnp.maximum(y + r_ref[...].astype(jnp.float32), 0.0)
    if m_valid < y.shape[0]:
        rows = lax.broadcasted_iota(jnp.int32, y.shape, 0)
        y = jnp.where(rows < m_valid, y, 0.0)
    o_ref[...] = y.astype(o_ref.dtype)


def _bn_res_bn_apply_kernel(y_ref, s_ref, sh_ref, yd_ref, sd_ref, shd_ref,
                            o_ref, *, m_valid):
    y = y_ref[...].astype(jnp.float32) * s_ref[...] + sh_ref[...]
    r = yd_ref[...].astype(jnp.float32) * sd_ref[...] + shd_ref[...]
    y = jnp.maximum(y + r, 0.0)
    if m_valid < y.shape[0]:
        rows = lax.broadcasted_iota(jnp.int32, y.shape, 0)
        y = jnp.where(rows < m_valid, y, 0.0)
    o_ref[...] = y.astype(o_ref.dtype)


# --------------------------- BN statistics helpers ----------------------------

def _bn_scale_shift(s, ss, gamma_p, beta_p, m):
    inv_m = 1.0 / m
    mean = s * inv_m
    # TODO(synk): E[x^2]-mean^2 in f32 (sums kept in f32); switch to two-pass
    # variance if batch size grows substantially.
    var = jnp.maximum(ss * inv_m - mean * mean, 0.0)
    scale = gamma_p * lax.rsqrt(var + BN_EPS)
    shift = beta_p - mean * scale
    return scale, shift


# --------------------------- im2col (XLA glue) --------------------------------

def _extract_patches(x4d, ksize, stride, pad):
    """(n,h,w,c) -> ((n*ho*wo, k*k*c), ho, wo); rows ordered (kh, kw, c)."""
    # TODO(synk): replace with an in-kernel tap grid axis (index_map offsets
    # into the padded NHWC tensor) to avoid materializing patches in HBM.
    n, h, w, c = x4d.shape
    xp = jnp.pad(x4d, ((0, 0), (pad, pad), (pad, pad), (0, 0)))
    ho = (h + 2 * pad - ksize) // stride + 1
    wo = (w + 2 * pad - ksize) // stride + 1
    cols = []
    for i in range(ksize):
        for j in range(ksize):
            cols.append(xp[:, i:i + stride * (ho - 1) + 1:stride,
                           j:j + stride * (wo - 1) + 1:stride, :])
    a = jnp.concatenate(cols, axis=-1).reshape(n * ho * wo, ksize * ksize * c)
    return a, ho, wo


# --------------------------- network pieces -----------------------------------

@jax.jit
def stem_forward(x_nchw, w1, g1, b1):
    x = jnp.transpose(x_nchw, (0, 2, 3, 1)).astype(jnp.bfloat16)   # NHWC
    n, h, w, _ = x.shape
    patches, ho, wo = _extract_patches(x, 7, 2, 3)
    m = n * ho * wo
    y, s, ss = _conv_mm(patches, w1, m)
    sc, sh = _bn_scale_shift(s, ss, g1, b1, m)
    xa = jnp.maximum(y[:m].astype(jnp.float32) * sc + sh, 0.0)
    xa = xa.reshape(n, ho, wo, y.shape[1])
    # TODO(synk): max-pool kept in plain XLA (reduce_window); negligible cost.
    xa = lax.reduce_window(xa, -jnp.inf, lax.max,
                           window_dimensions=(1, 3, 3, 1),
                           window_strides=(1, 2, 2, 1),
                           padding=((0, 0), (1, 1), (1, 1), (0, 0)))
    hp, wp = xa.shape[1], xa.shape[2]
    m2 = n * hp * wp
    rows = xa.reshape(m2, xa.shape[3]).astype(jnp.bfloat16)
    mp2 = max(_round_up(m2, 16), 16)
    if mp2 != m2:
        rows = jnp.pad(rows, ((0, mp2 - m2), (0, 0)))
    return rows


@functools.partial(
    jax.jit,
    static_argnames=("n", "h", "w", "cin", "cmid", "cout", "stride", "has_ds"))
def bottleneck_forward(x_rows, p, *, n, h, w, cin, cmid, cout, stride, has_ds):
    cin_p = _round_up(cin, 128)
    cmid_p = _round_up(cmid, 128)
    cout_p = _round_up(cout, 128)
    m_in = n * h * w
    ho = (h - 1) // stride + 1
    wo = (w - 1) // stride + 1
    m_out = n * ho * wo
    mp_out = max(_round_up(m_out, 16), 16)

    if stride != 1:
        a_in = x_rows[:m_in].reshape(n, h, w, cin_p)[:, ::stride, ::stride, :]
        a_in = a_in.reshape(m_out, cin_p)
    else:
        a_in = x_rows

    # conv1 (1x1, stride s) — stats for bn1 emitted by the matmul epilogue.
    y1, s1, ss1 = _conv_mm(a_in, p["w1"], m_out)
    sc1, sh1 = _bn_scale_shift(s1, ss1, p["g1"], p["b1"], m_out)

    # bn1 + ReLU folded into the XLA patch-building fusion (padding-safe).
    x1 = jnp.maximum(y1[:m_out].astype(jnp.float32) * sc1 + sh1, 0.0)
    x1 = x1.astype(jnp.bfloat16).reshape(n, ho, wo, cmid_p)
    patches, _, _ = _extract_patches(x1, 3, 1, 1)

    # conv2 (3x3) — stats for bn2 in epilogue.
    y2, s2, ss2 = _conv_mm(patches, p["w2"], m_out)
    sc2, sh2 = _bn_scale_shift(s2, ss2, p["g2"], p["b2"], m_out)

    # conv3 (1x1) with bn2+ReLU fused as the A-tile prologue; bn3 stats in
    # epilogue.
    y3, s3, ss3 = _conv_mm(y2, p["w3"], m_out, scale=sc2, shift=sh2)
    sc3, sh3 = _bn_scale_shift(s3, ss3, p["g3"], p["b3"], m_out)

    if has_ds:
        yd, sd, ssd = _conv_mm(a_in, p["wd"], m_out)
        scd, shd = _bn_scale_shift(sd, ssd, p["gd"], p["bd"], m_out)
        out = pl.pallas_call(
            functools.partial(_bn_res_bn_apply_kernel, m_valid=m_out),
            out_shape=jax.ShapeDtypeStruct((mp_out, cout_p), jnp.bfloat16),
        )(y3, sc3, sh3, yd, scd, shd)
    else:
        out = pl.pallas_call(
            functools.partial(_bn_res_apply_kernel, m_valid=m_out),
            out_shape=jax.ShapeDtypeStruct((mp_out, cout_p), jnp.bfloat16),
        )(y3, sc3, sh3, x_rows)
    return out


@functools.partial(jax.jit, static_argnames=("n", "h", "w"))
def head_forward(x_rows, fc_w_t, fc_b, *, n, h, w):
    m = n * h * w
    cp = x_rows.shape[1]
    x4 = x_rows[:m].astype(jnp.float32).reshape(n, h, w, cp)
    pooled = jnp.mean(x4, axis=(1, 2))                 # AdaptiveAvgPool2d(1)
    mp = max(_round_up(n, 16), 16)
    a = jnp.pad(pooled.astype(jnp.bfloat16), ((0, mp - n), (0, 0)))
    out = _plain_mm(a, fc_w_t)
    return out[:n, :fc_b.shape[0]] + fc_b[None, :]


def resnet152_forward(x_nchw, params):
    n = x_nchw.shape[0]
    H, W = x_nchw.shape[2], x_nchw.shape[3]
    x_rows = stem_forward(x_nchw, params["conv1"], params["g1"], params["b1"])
    h = (H + 6 - 7) // 2 + 1
    w = (W + 6 - 7) // 2 + 1
    h = (h + 2 - 3) // 2 + 1
    w = (w + 2 - 3) // 2 + 1
    cin = 64
    layer_cfg = [(256, 1), (512, 2), (1024, 2), (2048, 2)]
    for (out_c, stride0), layer_params in zip(layer_cfg, params["layers"]):
        for idx, p in enumerate(layer_params):
            stride = stride0 if idx == 0 else 1
            has_ds = (stride != 1) or (cin != out_c)
            x_rows = bottleneck_forward(
                x_rows, p, n=n, h=h, w=w, cin=cin, cmid=out_c // 4,
                cout=out_c, stride=stride, has_ds=has_ds)
            h = (h - 1) // stride + 1
            w = (w - 1) // stride + 1
            cin = out_c
    return head_forward(x_rows, params["fc_w_t"], params["fc_b"], n=n, h=h, w=w)


# --------------------------- parameter init -----------------------------------

def _conv_init(key, cout, cin, k):
    std = (2.0 / (cout * k * k)) ** 0.5        # kaiming_normal, fan_out, relu
    return std * jax.random.normal(key, (cout, cin, k, k), jnp.float32)


def _pack_conv(w, cin_pad=None):
    """(cout,cin,kh,kw) -> (round_up(kh*kw*cin_pad,128), round_up(cout,128)) bf16."""
    cout, cin, kh, kw = w.shape
    if cin_pad is None:
        cin_pad = _round_up(cin, 128)
    if cin_pad > cin:
        w = jnp.pad(w, ((0, 0), (0, cin_pad - cin), (0, 0), (0, 0)))
    kdim = kh * kw * cin_pad
    m = jnp.transpose(w, (2, 3, 1, 0)).reshape(kdim, cout)
    kp, npad = _round_up(kdim, 128), _round_up(cout, 128)
    return jnp.pad(m, ((0, kp - kdim), (0, npad - cout))).astype(jnp.bfloat16)


def _pack_bn(c):
    cp = _round_up(c, 128)
    g = jnp.pad(jnp.ones((c,), jnp.float32), (0, cp - c)).reshape(1, cp)
    b = jnp.zeros((1, cp), jnp.float32)
    return g, b


def init_params(key):
    def next_key():
        nonlocal key
        key, sub = jax.random.split(key)
        return sub

    g1, b1 = _pack_bn(64)
    params = {
        "conv1": _pack_conv(_conv_init(next_key(), 64, 3, 7), cin_pad=3),
        "g1": g1, "b1": b1,
    }
    layers_cfg = [(256, 3), (512, 8), (1024, 36), (2048, 3)]
    in_c = 64
    layers = []
    for li, (out_c, num_blocks) in enumerate(layers_cfg):
        stride0 = 1 if li == 0 else 2
        blocks = []
        for bi in range(num_blocks):
            s = stride0 if bi == 0 else 1
            mid = out_c // 4
            g1b, b1b = _pack_bn(mid)
            g2b, b2b = _pack_bn(mid)
            g3b, b3b = _pack_bn(out_c)
            p = {
                "w1": _pack_conv(_conv_init(next_key(), mid, in_c, 1)),
                "g1": g1b, "b1": b1b,
                "w2": _pack_conv(_conv_init(next_key(), mid, mid, 3)),
                "g2": g2b, "b2": b2b,
                "w3": _pack_conv(_conv_init(next_key(), out_c, mid, 1)),
                "g3": g3b, "b3": b3b,
            }
            if s != 1 or in_c != out_c:
                gd, bd = _pack_bn(out_c)
                p["wd"] = _pack_conv(_conv_init(next_key(), out_c, in_c, 1))
                p["gd"] = gd
                p["bd"] = bd
            blocks.append(p)
            in_c = out_c
        layers.append(blocks)
    params["layers"] = layers

    bound = 1.0 / (2048.0 ** 0.5)             # nn.Linear default-style init
    fc_w = jax.random.uniform(next_key(), (1000, 2048), jnp.float32,
                              -bound, bound)
    params["fc_w_t"] = jnp.pad(
        fc_w.T, ((0, 0), (0, _round_up(1000, 128) - 1000))).astype(jnp.bfloat16)
    params["fc_b"] = jax.random.uniform(next_key(), (1000,), jnp.float32,
                                        -bound, bound)
    return params


# --------------------------- main ---------------------------------------------

if __name__ == "__main__":
    root = jax.random.PRNGKey(0)
    pkey, xkey = jax.random.split(root)
    params = init_params(pkey)

    # Small input consistent with the module: NCHW, 3 input channels.
    # 32x32 -> stem 16x16 -> maxpool 8x8 -> 4x4 -> 2x2 -> 1x1.
    x = jax.random.normal(xkey, (2, 3, 32, 32), jnp.float32)

    logits = resnet152_forward(x, params)
    logits = jax.block_until_ready(logits)

    assert logits.shape == (2, 1000), logits.shape
    assert bool(jnp.all(jnp.isfinite(logits)))
    print("KERNEL_OK")
</pallas_src>

<mosaic_0001>
module attributes {stable_mosaic.version = 11 : i64} {
  func.func @_mm_stats_kernel(%arg0: i32, %arg1: i32, %arg2: memref<512x256xbf16, #tpu.memory_space<vmem>>, %arg3: memref<256x128xbf16, #tpu.memory_space<vmem>>, %arg4: memref<512x128xbf16, #tpu.memory_space<vmem>>, %arg5: memref<1x128xf32, #tpu.memory_space<vmem>>, %arg6: memref<1x128xf32, #tpu.memory_space<vmem>>, %arg7: memref<512x128xf32, #tpu.memory_space<vmem>>) attributes {dimension_semantics = [#tpu.dimension_semantics<parallel>, #tpu.dimension_semantics<arbitrary>], iteration_bounds = array<i64: 1, 1>, scalar_prefetch = 0 : i64, scratch_operands = 1 : i64, tpu.core_type = #tpu.core_type<tc>, window_params = [{transform_indices = @transform_0, window_bounds = array<i64: 512, 256>}, {transform_indices = @transform_1, window_bounds = array<i64: 256, 128>}, {transform_indices = @transform_2, window_bounds = array<i64: 512, 128>}, {transform_indices = @transform_3, window_bounds = array<i64: 1, 128>}, {transform_indices = @transform_4, window_bounds = array<i64: 1, 128>}]} {
    %c0_i32 = arith.constant 0 : i32
    %0 = arith.cmpi eq, %arg1, %c0_i32 : i32
    %1 = arith.extui %0 : i1 to i32
    %c0_i32_0 = arith.constant 0 : i32
    %2 = arith.cmpi ne, %1, %c0_i32_0 : i32
    scf.if %2 {
      %cst_10 = arith.constant 0.000000e+00 : f32
      %12 = vector.broadcast %cst_10 : f32 to vector<512x128xf32>
      %c0_11 = arith.constant 0 : index
      %c0_12 = arith.constant 0 : index
      %13 = vector.load %arg7[%c0_11, %c0_12] : memref<512x128xf32, #tpu.memory_space<vmem>>, vector<512x128xf32>
      tpu.vector_store %arg7[%c0_11, %c0_12], %12 {strides = array<i32>} : memref<512x128xf32, #tpu.memory_space<vmem>>, vector<512x128xf32>,
    } else {
    }
    %c0 = arith.constant 0 : index
    %c0_1 = arith.constant 0 : index
    %3 = vector.load %arg7[%c0, %c0_1] : memref<512x128xf32, #tpu.memory_space<vmem>>, vector<512x128xf32>
    %c0_2 = arith.constant 0 : index
    %c0_3 = arith.constant 0 : index
    %4 = vector.load %arg2[%c0_2, %c0_3] : memref<512x256xbf16, #tpu.memory_space<vmem>>, vector<512x256xbf16>
    %c0_4 = arith.constant 0 : index
    %c0_5 = arith.constant 0 : index
    %5 = vector.load %arg3[%c0_4, %c0_5] : memref<256x128xbf16, #tpu.memory_space<vmem>>, vector<256x128xbf16>
    %cst = arith.constant dense<0.000000e+00> : vector<512x128xf32>
    %6 = tpu.matmul %4, %5, %cst {dimension_numbers = #tpu.dot_dimension_numbers<[1], [0], [0], [1], [0, 0, 1, 1], [], []>} : vector<512x256xbf16>, vector<256x128xbf16>, vector<512x128xf32> -> vector<512x128xf32>
    %7 = arith.addf %3, %6 : vector<512x128xf32>
    %c0_6 = arith.constant 0 : index
    %c0_7 = arith.constant 0 : index
    %8 = vector.load %arg7[%c0_6, %c0_7] : memref<512x128xf32, #tpu.memory_space<vmem>>, vector<512x128xf32>
    tpu.vector_store %arg7[%c0_6, %c0_7], %7 {strides = array<i32>} : memref<512x128xf32, #tpu.memory_space<vmem>>, vector<512x128xf32>,
    %c0_i32_8 = arith.constant 0 : i32
    %9 = arith.cmpi eq, %arg1, %c0_i32_8 : i32
    %10 = arith.extui %9 : i1 to i32
    %c0_i32_9 = arith.constant 0 : i32
    %11 = arith.cmpi ne, %10, %c0_i32_9 : i32
    scf.if %11 {
      %c0_10 = arith.constant 0 : index
      %c0_11 = arith.constant 0 : index
      %12 = vector.load %arg7[%c0_10, %c0_11] : memref<512x128xf32, #tpu.memory_space<vmem>>, vector<512x128xf32>
      %13 = arith.truncf %12 : vector<512x128xf32> to vector<512x128xbf16>
      %c0_12 = arith.constant 0 : index
      %c0_13 = arith.constant 0 : index
      %14 = vector.load %arg4[%c0_12, %c0_13] : memref<512x128xbf16, #tpu.memory_space<vmem>>, vector<512x128xbf16>
      tpu.vector_store %arg4[%c0_12, %c0_13], %13 {strides = array<i32>} : memref<512x128xbf16, #tpu.memory_space<vmem>>, vector<512x128xbf16>,
      %cst_14 = arith.constant dense<0.000000e+00> : vector<128xf32>
      %15 = vector.multi_reduction <add>, %12, %cst_14 [0] : vector<512x128xf32> to vector<128xf32>
      %16 = vector.shape_cast %15 : vector<128xf32> to vector<1x128xf32>
      %c0_15 = arith.constant 0 : index
      %c0_16 = arith.constant 0 : index
      %17 = vector.load %arg5[%c0_15, %c0_16] : memref<1x128xf32, #tpu.memory_space<vmem>>, vector<1x128xf32>
      tpu.vector_store %arg5[%c0_15, %c0_16], %16 {strides = array<i32>} : memref<1x128xf32, #tpu.memory_space<vmem>>, vector<1x128xf32>,
      %18 = arith.mulf %12, %12 : vector<512x128xf32>
      %cst_17 = arith.constant dense<0.000000e+00> : vector<128xf32>
      %19 = vector.multi_reduction <add>, %18, %cst_17 [0] : vector<512x128xf32> to vector<128xf32>
      %20 = vector.shape_cast %19 : vector<128xf32> to vector<1x128xf32>
      %c0_18 = arith.constant 0 : index
      %c0_19 = arith.constant 0 : index
      %21 = vector.load %arg6[%c0_18, %c0_19] : memref<1x128xf32, #tpu.memory_space<vmem>>, vector<1x128xf32>
      tpu.vector_store %arg6[%c0_18, %c0_19], %20 {strides = array<i32>} : memref<1x128xf32, #tpu.memory_space<vmem>>, vector<1x128xf32>,
    } else {
    }
    return
  }
  func.func @transform_0(%arg0: i32, %arg1: i32) -> (i32, i32) {
    %c0_i32 = arith.constant 0 : i32
    %c0_i32_0 = arith.constant 0 : i32
    return %c0_i32, %arg1 : i32, i32
  }
  func.func @transform_1(%arg0: i32, %arg1: i32) -> (i32, i32) {
    %c0_i32 = arith.constant 0 : i32
    return %arg1, %arg0 : i32, i32
  }
  func.func @transform_2(%arg0: i32, %arg1: i32) -> (i32, i32) {
    %c0_i32 = arith.constant 0 : i32
    %c0_i32_0 = arith.constant 0 : i32
    return %c0_i32, %arg0 : i32, i32
  }
  func.func @transform_3(%arg0: i32, %arg1: i32) -> (i32, i32) {
    %c0_i32 = arith.constant 0 : i32
    %c0_i32_0 = arith.constant 0 : i32
    return %c0_i32, %arg0 : i32, i32
  }
  func.func @transform_4(%arg0: i32, %arg1: i32) -> (i32, i32) {
    %c0_i32 = arith.constant 0 : i32
    %c0_i32_0 = arith.constant 0 : i32
    return %c0_i32, %arg0 : i32, i32
  }
}

</mosaic_0001>

<bundles_post_ra>
// kernel: stem_forward.1
= control target key start
LH: loop header
LB: loop body
LE: loop exit
PB: predicated region body
PF: predicated region fallthrough
CT: control target
= control target key end

     0   :  { %s2911_s1 = inlined_call_operand.vmem [shape: bf16[256,128], index: 1, kind: input, shape index: {}]   ;;  %s2912_s0 = inlined_call_operand.vmem [shape: bf16[512,256], index: 0, kind: input, shape index: {}]   ;;  %s2913_s2 = inlined_call_operand.vmem [shape: bf16[512,128], index: 2, kind: output, shape index: {0}]   ;;  %s2914_s3 = inlined_call_operand.vmem [shape: f32[1,128], index: 3, kind: output, shape index: {1}]   ;;  %s2915_s4 = inlined_call_operand.vmem [shape: f32[1,128], index: 4, kind: output, shape index: {2}]  }
   0x1   :  { %v1926_v0 = vld [vmem:[%s2911_s1 + $0x38] sm:$0xff]  ;;  %v1925_v2 = vld [vmem:[%s2911_s1 + $0x30] sm:$0xff]  ;;  %v1924_v4 = vld [vmem:[%s2911_s1 + $0x28] sm:$0xff] }
   0x2   :  { %v1934_v1 = vld [vmem:[%s2911_s1 + $0x78] sm:$0xff]  ;;  %658 = vmatpush.bf16.msra.mxu0 %v1926_v0  ;;  %v1933_v3 = vld [vmem:[%s2911_s1 + $0x70] sm:$0xff]  ;;  %2126 = vmatpush.bf16.msra.mxu2 %v1926_v0  ;;  %v1932_v5 = vld [vmem:[%s2911_s1 + $0x68] sm:$0xff] }
   0x3   :  { %827 = vmatpush.bf16.msra.mxu1 %v1934_v1  ;;  %2134 = vmatpush.bf16.msra.mxu3 %v1934_v1  ;;  %v1923_v6 = vld [vmem:[%s2911_s1 + $0x20] sm:$0xff]  ;;  %v1922_v8 = vld [vmem:[%s2911_s1 + $0x18] sm:$0xff]  ;;  %v1921_v10 = vld [vmem:[%s2911_s1 + $0x10] sm:$0xff] }
   0x4   :  { %v1931_v7 = vld [vmem:[%s2911_s1 + $0x60] sm:$0xff]  ;;  %v1930_v9 = vld [vmem:[%s2911_s1 + $0x58] sm:$0xff]  ;;  %v1929_v11 = vld [vmem:[%s2911_s1 + $0x50] sm:$0xff] }
   0x5   :  { %v1920_v12 = vld [vmem:[%s2911_s1 + $0x8] sm:$0xff]  ;;  %v1919_v14 = vld [vmem:[%s2911_s1] sm:$0xff]  ;;  %v1545_v22 = vld [vmem:[%s2912_s0 + $0x10] sm:$0xf] }
   0x6   :  { %659 = vmatpush.bf16.msra.mxu0 %v1925_v2  ;;  %2127 = vmatpush.bf16.msra.mxu2 %v1925_v2  ;;  %v1928_v13 = vld [vmem:[%s2911_s1 + $0x48] sm:$0xff]  ;;  %v1927_v15 = vld [vmem:[%s2911_s1 + $0x40] sm:$0xff]  ;;  %v1858_v23 = vld [vmem:[%s2912_s0 + $0x14] sm:$0xf0] }
   0x7   :  { %828 = vmatpush.bf16.msra.mxu1 %v1933_v3  ;;  %2135 = vmatpush.bf16.msra.mxu3 %v1933_v3  ;;  %v1537_v16 = vld [vmem:[%s2912_s0] sm:$0xf]  ;;  %v1856_v17 = vld [vmem:[%s2912_s0 + $0x4] sm:$0xf0]  ;;  %v1855_v18 = vld [vmem:[%s2912_s0 + $0x4] sm:$0xf]  ;;  %v1546_v26 = vor.u32 %v1858_v23, %v1545_v22 }
   0x8   :  { %v1539_v19 = vld [vmem:[%s2912_s0 + $0x8] sm:$0xf0]  ;;  %v1538_v20 = vor.u32 %v1856_v17, %v1537_v16  ;;  %v1857_v24 = vld [vmem:[%s2912_s0 + $0x14] sm:$0xf]  ;;  %v1547_v25 = vld [vmem:[%s2912_s0 + $0x18] sm:$0xf0] }
   0x9   :  { %v1542_v21 = vor.u32 %v1855_v18, %v1539_v19  ;;  %v1550_v27 = vor.u32 %v1857_v24, %v1547_v25  ;;  %v1665_v28 = vld [vmem:[%s2912_s0 + $0x100] sm:$0xf]  ;;  %v1888_v29 = vld [vmem:[%s2912_s0 + $0x104] sm:$0xf0]  ;;  %v1887_v30 = vld [vmem:[%s2912_s0 + $0x104] sm:$0xf] }
   0xa   :  { %660 = vmatpush.bf16.msra.mxu0 %v1924_v4  ;;  %2128 = vmatpush.bf16.msra.mxu2 %v1924_v4  ;;  %v1666_v31 = vor.u32 %v1888_v29, %v1665_v28  ;;  %v1667_v32 = vld [vmem:[%s2912_s0 + $0x108] sm:$0xf0]  ;;  %v1553_v34 = vld [vmem:[%s2912_s0 + $0x20] sm:$0xf]  ;;  %v1860_v35 = vld [vmem:[%s2912_s0 + $0x24] sm:$0xf0] }
   0xb   :  { %829 = vmatpush.bf16.msra.mxu1 %v1932_v5  ;;  %2136 = vmatpush.bf16.msra.mxu3 %v1932_v5  ;;  %v1670_v33 = vor.u32 %v1887_v30, %v1667_v32  ;;  %v1859_v36 = vld [vmem:[%s2912_s0 + $0x24] sm:$0xf]  ;;  %v1555_v37 = vld [vmem:[%s2912_s0 + $0x28] sm:$0xf0]  ;;  %v1554_v38 = vor.u32 %v1860_v35, %v1553_v34  ;;  %v1673_v40 = vld [vmem:[%s2912_s0 + $0x110] sm:$0xf] }
   0xc   :  { %v1558_v39 = vor.u32 %v1859_v36, %v1555_v37  ;;  %v1890_v41 = vld [vmem:[%s2912_s0 + $0x114] sm:$0xf0]  ;;  %v1889_v42 = vld [vmem:[%s2912_s0 + $0x114] sm:$0xf]  ;;  %v1675_v44 = vld [vmem:[%s2912_s0 + $0x118] sm:$0xf0] }
   0xd   :  { %v1674_v43 = vor.u32 %v1890_v41, %v1673_v40  ;;  %v1678_v45 = vor.u32 %v1889_v42, %v1675_v44  ;;  %v1561_v46 = vld [vmem:[%s2912_s0 + $0x30] sm:$0xf]  ;;  %v1862_v47 = vld [vmem:[%s2912_s0 + $0x34] sm:$0xf0]  ;;  %v1861_v48 = vld [vmem:[%s2912_s0 + $0x34] sm:$0xf] }
   0xe   :  { %661 = vmatpush.bf16.msra.mxu0 %v1923_v6  ;;  %2129 = vmatpush.bf16.msra.mxu2 %v1923_v6  ;;  %v1563_v49 = vld [vmem:[%s2912_s0 + $0x38] sm:$0xf0]  ;;  %v1562_v50 = vor.u32 %v1862_v47, %v1561_v46  ;;  %v1681_v52 = vld [vmem:[%s2912_s0 + $0x120] sm:$0xf]  ;;  %v1892_v53 = vld [vmem:[%s2912_s0 + $0x124] sm:$0xf0] }
   0xf   :  { %830 = vmatpush.bf16.msra.mxu1 %v1931_v7  ;;  %2137 = vmatpush.bf16.msra.mxu3 %v1931_v7  ;;  %v1566_v51 = vor.u32 %v1861_v48, %v1563_v49  ;;  %v1891_v54 = vld [vmem:[%s2912_s0 + $0x124] sm:$0xf]  ;;  %v1682_v55 = vor.u32 %v1892_v53, %v1681_v52  ;;  %v1683_v56 = vld [vmem:[%s2912_s0 + $0x128] sm:$0xf0]  ;;  %v1569_v58 = vld [vmem:[%s2912_s0 + $0x40] sm:$0xf] }
  0x10   :  { %v1686_v57 = vor.u32 %v1891_v54, %v1683_v56  ;;  %v1864_v59 = vld [vmem:[%s2912_s0 + $0x44] sm:$0xf0]  ;;  %v1863_v60 = vld [vmem:[%s2912_s0 + $0x44] sm:$0xf]  ;;  %v1571_v61 = vld [vmem:[%s2912_s0 + $0x48] sm:$0xf0] }
  0x11   :  { %v1570_v62 = vor.u32 %v1864_v59, %v1569_v58  ;;  %v1574_v63 = vor.u32 %v1863_v60, %v1571_v61  ;;  %v1689_v0 = vld [vmem:[%s2912_s0 + $0x130] sm:$0xf]  ;;  %v1894_v1 = vld [vmem:[%s2912_s0 + $0x134] sm:$0xf0]  ;;  %v1893_v2 = vld [vmem:[%s2912_s0 + $0x134] sm:$0xf] }
  0x12   :  { %662 = vmatpush.bf16.msra.mxu0 %v1922_v8  ;;  %2130 = vmatpush.bf16.msra.mxu2 %v1922_v8  ;;  %v1690_v3 = vor.u32 %v1894_v1, %v1689_v0  ;;  %v1691_v4 = vld [vmem:[%s2912_s0 + $0x138] sm:$0xf0]  ;;  %v1577_v6 = vld [vmem:[%s2912_s0 + $0x50] sm:$0xf]  ;;  %v1866_v7 = vld [vmem:[%s2912_s0 + $0x54] sm:$0xf0] }
  0x13   :  { %831 = vmatpush.bf16.msra.mxu1 %v1930_v9  ;;  %2138 = vmatpush.bf16.msra.mxu3 %v1930_v9  ;;  %v1694_v5 = vor.u32 %v1893_v2, %v1691_v4  ;;  %v1865_v8 = vld [vmem:[%s2912_s0 + $0x54] sm:$0xf]  ;;  %v1579_v9 = vld [vmem:[%s2912_s0 + $0x58] sm:$0xf0]  ;;  %v1699_v16 = vld [vmem:[%s2912_s0 + $0x148] sm:$0xf0] }
  0x14   :  { %v1585_v18 = vld [vmem:[%s2912_s0 + $0x60] sm:$0xf]  ;;  %v1868_v19 = vld [vmem:[%s2912_s0 + $0x64] sm:$0xf0]  ;;  %v1705_v24 = vld [vmem:[%s2912_s0 + $0x150] sm:$0xf] }
  0x15   :  { %v1586_v22 = vor.u32 %v1868_v19, %v1585_v18  ;;  %v1898_v25 = vld [vmem:[%s2912_s0 + $0x154] sm:$0xf0]  ;;  %v1707_v28 = vld [vmem:[%s2912_s0 + $0x158] sm:$0xf0]  ;;  %v1593_v30 = vld [vmem:[%s2912_s0 + $0x70] sm:$0xf] }
  0x16   :  { %663 = vmatpush.bf16.msra.mxu0 %v1921_v10  ;;  %2131 = vmatpush.bf16.msra.mxu2 %v1921_v10  ;;  %v1578_v10 = vor.u32 %v1866_v7, %v1577_v6  ;;  %v1869_v32 = vld [vmem:[%s2912_s0 + $0x74] sm:$0xf]  ;;  %v1713_v36 = vld [vmem:[%s2912_s0 + $0x160] sm:$0xf]  ;;  %v1900_v37 = vld [vmem:[%s2912_s0 + $0x164] sm:$0xf0] }
  0x17   :  { %832 = vmatpush.bf16.msra.mxu1 %v1929_v11  ;;  %2139 = vmatpush.bf16.msra.mxu3 %v1929_v11  ;;  %v1582_v11 = vor.u32 %v1865_v8, %v1579_v9  ;;  %v1715_v40 = vld [vmem:[%s2912_s0 + $0x168] sm:$0xf0]  ;;  %v1601_v42 = vld [vmem:[%s2912_s0 + $0x80] sm:$0xf]  ;;  %v1871_v44 = vld [vmem:[%s2912_s0 + $0x84] sm:$0xf] }
  0x18   :  { %v1901_v52 = vld [vmem:[%s2912_s0 + $0x174] sm:$0xf]  ;;  %v1723_v54 = vld [vmem:[%s2912_s0 + $0x178] sm:$0xf0]  ;;  %v1609_v0 = vld [vmem:[%s2912_s0 + $0x90] sm:$0xf] }
  0x19   :  { %v1874_v1 = vld [vmem:[%s2912_s0 + $0x94] sm:$0xf0]  ;;  %v1873_v2 = vld [vmem:[%s2912_s0 + $0x94] sm:$0xf] }
  0x1a   :  { %664 = vmatpush.bf16.msra.mxu0 %v1920_v12  ;;  %2132 = vmatpush.bf16.msra.mxu2 %v1920_v12  ;;  %v1697_v12 = vld [vmem:[%s2912_s0 + $0x140] sm:$0xf] }
  0x1b   :  { %833 = vmatpush.bf16.msra.mxu1 %v1928_v13  ;;  %2140 = vmatpush.bf16.msra.mxu3 %v1928_v13  ;;  %v1896_v13 = vld [vmem:[%s2912_s0 + $0x144] sm:$0xf0] }
  0x1e   :  { %665 = vmatpush.bf16.msra.mxu0 %v1919_v14  ;;  %2133 = vmatpush.bf16.msra.mxu2 %v1919_v14  ;;  %v1895_v14 = vld [vmem:[%s2912_s0 + $0x144] sm:$0xf] }
  0x1f   :  { %834 = vmatpush.bf16.msra.mxu1 %v1927_v15  ;;  %2141 = vmatpush.bf16.msra.mxu3 %v1927_v15  ;;  %v1698_v15 = vor.u32 %v1896_v13, %v1697_v12  ;;  %v1702_v17 = vor.u32 %v1895_v14, %v1699_v16  ;;  %v1903_v12 = vld [vmem:[%s2912_s0 + $0x184] sm:$0xf]  ;;  %v1731_v16 = vld [vmem:[%s2912_s0 + $0x188] sm:$0xf0] }
  0x21   :  { %666 = vmatmul.bf16.vlgmr.msra.gmra.mxu0 %v1538_v20  ;;  %746 = vmatmul.bf16.vlgmr.msra.gmra.mxu2 %v1666_v31  ;;  %v1867_v20 = vld [vmem:[%s2912_s0 + $0x64] sm:$0xf]  ;;  %v1870_v31 = vld [vmem:[%s2912_s0 + $0x74] sm:$0xf0] }
  0x22   :  { %835 = vmatmul.bf16.vlgmr.msra.gmra.mxu1 %v1542_v21  ;;  %915 = vmatmul.bf16.vlgmr.msra.gmra.mxu3 %v1670_v33  ;;  %v1587_v21 = vld [vmem:[%s2912_s0 + $0x68] sm:$0xf0]  ;;  %v1595_v33 = vld [vmem:[%s2912_s0 + $0x78] sm:$0xf0]  ;;  %v1594_v34 = vor.u32 %v1870_v31, %v1593_v30 }
  0x23   :  { %v1590_v23 = vor.u32 %v1867_v20, %v1587_v21  ;;  %v1598_v35 = vor.u32 %v1869_v32, %v1595_v33  ;;  %v1619_v30 = vld [vmem:[%s2912_s0 + $0xa8] sm:$0xf0] }
  0x31   :  { %671 = vmatmul.bf16.gmra.mxu0 %v1546_v26  ;;  %751 = vmatmul.bf16.gmra.mxu2 %v1674_v43  ;;  %v1897_v26 = vld [vmem:[%s2912_s0 + $0x154] sm:$0xf]  ;;  %v1872_v43 = vld [vmem:[%s2912_s0 + $0x84] sm:$0xf0] }
  0x32   :  { %840 = vmatmul.bf16.gmra.mxu1 %v1550_v27  ;;  %920 = vmatmul.bf16.gmra.mxu3 %v1678_v45  ;;  %v1706_v27 = vor.u32 %v1898_v25, %v1705_v24  ;;  %v1710_v29 = vor.u32 %v1897_v26, %v1707_v28  ;;  %v1603_v45 = vld [vmem:[%s2912_s0 + $0x88] sm:$0xf0]  ;;  %v1602_v46 = vor.u32 %v1872_v43, %v1601_v42  ;;  %v1876_v28 = vld [vmem:[%s2912_s0 + $0xa4] sm:$0xf0]  ;;  %v1906_v42 = vld [vmem:[%s2912_s0 + $0x194] sm:$0xf0] }
  0x33   :  { %v1606_v47 = vor.u32 %v1871_v44, %v1603_v45  ;;  %v1905_v43 = vld [vmem:[%s2912_s0 + $0x194] sm:$0xf] }
  0x41   :  { %676 = vmatmul.bf16.gmra.mxu0 %v1554_v38  ;;  %756 = vmatmul.bf16.gmra.mxu2 %v1682_v55  ;;  %v1899_v38 = vld [vmem:[%s2912_s0 + $0x164] sm:$0xf]  ;;  %v1726_v55 = vor.u32 %v1901_v52, %v1723_v54 }
  0x42   :  { %845 = vmatmul.bf16.gmra.mxu1 %v1558_v39  ;;  %925 = vmatmul.bf16.gmra.mxu3 %v1686_v57  ;;  %v1714_v39 = vor.u32 %v1900_v37, %v1713_v36  ;;  %v1718_v41 = vor.u32 %v1899_v38, %v1715_v40 }
  0x51   :  { %681 = vmatmul.bf16.gmra.mxu0 %v1562_v50  ;;  %761 = vmatmul.bf16.gmra.mxu2 %v1690_v3  ;;  %v1721_v50 = vld [vmem:[%s2912_s0 + $0x170] sm:$0xf]  ;;  %v1611_v3 = vld [vmem:[%s2912_s0 + $0x98] sm:$0xf0] }
  0x52   :  { %850 = vmatmul.bf16.gmra.mxu1 %v1566_v51  ;;  %930 = vmatmul.bf16.gmra.mxu3 %v1694_v5  ;;  %v1902_v51 = vld [vmem:[%s2912_s0 + $0x174] sm:$0xf0]  ;;  %v1610_v5 = vor.u32 %v1874_v1, %v1609_v0  ;;  %v1614_v6 = vor.u32 %v1873_v2, %v1611_v3 }
  0x53   :  { %v1722_v53 = vor.u32 %v1902_v51, %v1721_v50 }
  0x61   :  { %686 = vmatmul.bf16.gmra.mxu0 %v1570_v62  ;;  %766 = vmatmul.bf16.gmra.mxu2 %v1698_v15 }
  0x62   :  { %855 = vmatmul.bf16.gmra.mxu1 %v1574_v63  ;;  %935 = vmatmul.bf16.gmra.mxu3 %v1702_v17  ;;  %v1734_v17 = vor.u32 %v1903_v12, %v1731_v16 }
  0x71   :  { %691 = vmatmul.bf16.gmra.mxu0 %v1578_v10  ;;  %771 = vmatmul.bf16.gmra.mxu2 %v1706_v27  ;;  %v1729_v10 = vld [vmem:[%s2912_s0 + $0x180] sm:$0xf] }
  0x72   :  { %860 = vmatmul.bf16.gmra.mxu1 %v1582_v11  ;;  %940 = vmatmul.bf16.gmra.mxu3 %v1710_v29  ;;  %v1904_v11 = vld [vmem:[%s2912_s0 + $0x184] sm:$0xf0]  ;;  %v1617_v27 = vld [vmem:[%s2912_s0 + $0xa0] sm:$0xf]  ;;  %v1875_v29 = vld [vmem:[%s2912_s0 + $0xa4] sm:$0xf] }
  0x73   :  { %v1730_v15 = vor.u32 %v1904_v11, %v1729_v10  ;;  %v1618_v32 = vor.u32 %v1876_v28, %v1617_v27  ;;  %v1622_v33 = vor.u32 %v1875_v29, %v1619_v30  ;;  %v1908_v10 = vld [vmem:[%s2912_s0 + $0x1a4] sm:$0xf0]  ;;  %v1907_v11 = vld [vmem:[%s2912_s0 + $0x1a4] sm:$0xf]  ;;  %v1633_v27 = vld [vmem:[%s2912_s0 + $0xc0] sm:$0xf] }
  0x74   :  { %v1880_v28 = vld [vmem:[%s2912_s0 + $0xc4] sm:$0xf0]  ;;  %v1879_v29 = vld [vmem:[%s2912_s0 + $0xc4] sm:$0xf]  ;;  %v1635_v30 = vld [vmem:[%s2912_s0 + $0xc8] sm:$0xf0] }
  0x81   :  { %696 = vmatmul.bf16.gmra.mxu0 %v1586_v22  ;;  %776 = vmatmul.bf16.gmra.mxu2 %v1714_v39 }
  0x82   :  { %865 = vmatmul.bf16.gmra.mxu1 %v1590_v23  ;;  %945 = vmatmul.bf16.gmra.mxu3 %v1718_v41  ;;  %v1737_v41 = vld [vmem:[%s2912_s0 + $0x190] sm:$0xf] }
  0x91   :  { %701 = vmatmul.bf16.gmra.mxu0 %v1594_v34  ;;  %781 = vmatmul.bf16.gmra.mxu2 %v1722_v53 }
  0x92   :  { %870 = vmatmul.bf16.gmra.mxu1 %v1598_v35  ;;  %950 = vmatmul.bf16.gmra.mxu3 %v1726_v55 }
  0x9e   :  { %v667_v48 = vpop.f32.mrf.mxu0 }
  0x9f   :  { %v836_v49 = vpop.f32.mrf.mxu1 }
  0xa0   :  { %v837_v56 = vadd.f32 %v836_v49, %v667_v48 }
  0xa1   :  { %706 = vmatmul.bf16.gmra.mxu0 %v1602_v46  ;;  %786 = vmatmul.bf16.gmra.mxu2 %v1730_v15  ;;  %v1738_v46 = vor.u32 %v1906_v42, %v1737_v41  ;;  %v1747_v15 = vld [vmem:[%s2912_s0 + $0x1a8] sm:$0xf0] }
  0xa2   :  { %875 = vmatmul.bf16.gmra.mxu1 %v1606_v47  ;;  %v1389_v60 = vmul.f32 %v837_v56, %v837_v56  ;;  %955 = vmatmul.bf16.gmra.mxu3 %v1734_v17  ;;  %v1739_v47 = vld [vmem:[%s2912_s0 + $0x198] sm:$0xf0]  ;;  %v1750_v17 = vor.u32 %v1907_v11, %v1747_v15  ;;  %v1911_v15 = vld [vmem:[%s2912_s0 + $0x1c4] sm:$0xf] }
  0xa3   :  { %v1742_v49 = vor.u32 %v1905_v43, %v1739_v47  ;;  %v1753_v43 = vld [vmem:[%s2912_s0 + $0x1b0] sm:$0xf] }
  0xa4   :  { %v747_v22 = vpop.f32.mrf.mxu2 }
  0xa5   :  { %v916_v23 = vpop.f32.mrf.mxu3 }
  0xa6   :  { %v669_v57 = vpop.f32.mrf.mxu0  ;;  %v2461_v36 = vadd.f32 %v916_v23, %v747_v22 }
  0xa7   :  { %v838_v58 = vpop.f32.mrf.mxu1 }
  0xa8   :  { %v839_v59 = vadd.f32 %v838_v58, %v669_v57 }
  0xaa   :  { %v1938_v61 = vpack.c.bf16 %v839_v59, %v837_v56  ;;  %v1319_v62 = vadd.f32 %v839_v59, %v837_v56  ;;  %v1390_v63 = vmul.f32 %v839_v59, %v839_v59  ;;  %v1625_v59 = vld [vmem:[%s2912_s0 + $0xb0] sm:$0xf] }
  0xac   :  { %1939 = vst [vmem:[%s2913_s2] sm:$0xff] %v1938_v61   ;;  %v1453_v4 = vadd.f32 %v1390_v63, %v1389_v60  ;;  %v749_v38 = vpop.f32.mrf.mxu2  ;;  %v1878_v60 = vld [vmem:[%s2912_s0 + $0xb4] sm:$0xf0]  ;;  %v1877_v61 = vld [vmem:[%s2912_s0 + $0xb4] sm:$0xf] }
  0xad   :  { %v918_v39 = vpop.f32.mrf.mxu3  ;;  %v1626_v0 = vor.u32 %v1878_v60, %v1625_v59 }
  0xae   :  { %v672_v7 = vpop.f32.mrf.mxu0  ;;  %v2463_v40 = vadd.f32 %v918_v39, %v749_v38 }
  0xaf   :  { %v841_v8 = vpop.f32.mrf.mxu1 }
  0xb0   :  { %v842_v9 = vadd.f32 %v841_v8, %v672_v7  ;;  %v2018_v48 = vpack.c.bf16 %v2463_v40, %v2461_v36 }
  0xb1   :  { %711 = vmatmul.bf16.gmra.mxu0 %v1610_v5  ;;  %791 = vmatmul.bf16.gmra.mxu2 %v1738_v46 }
  0xb2   :  { %v1320_v13 = vadd.f32 %v1319_v62, %v842_v9  ;;  %v1391_v14 = vmul.f32 %v842_v9, %v842_v9  ;;  %880 = vmatmul.bf16.gmra.mxu1 %v1614_v6  ;;  %2110 = vst [vmem:[%s2913_s2 + $0x80] sm:$0xff] %v2018_v48   ;;  %960 = vmatmul.bf16.gmra.mxu3 %v1742_v49  ;;  %v1627_v62 = vld [vmem:[%s2912_s0 + $0xb8] sm:$0xf0] }
  0xb3   :  { %v1630_v1 = vor.u32 %v1877_v61, %v1627_v62  ;;  %v1755_v49 = vld [vmem:[%s2912_s0 + $0x1b8] sm:$0xf0]  ;;  %v1641_v61 = vld [vmem:[%s2912_s0 + $0xd0] sm:$0xf]  ;;  %v1882_v62 = vld [vmem:[%s2912_s0 + $0xd4] sm:$0xf0] }
  0xb4   :  { %v1454_v18 = vadd.f32 %v1453_v4, %v1391_v14  ;;  %v752_v54 = vpop.f32.mrf.mxu2 }
  0xb5   :  { %v921_v55 = vpop.f32.mrf.mxu3 }
  0xb6   :  { %v674_v19 = vpop.f32.mrf.mxu0  ;;  %v2497_v4 = vadd.f32 %v921_v55, %v752_v54 }
  0xb7   :  { %v843_v20 = vpop.f32.mrf.mxu1 }
  0xb8   :  { %v844_v21 = vadd.f32 %v843_v20, %v674_v19 }
  0xba   :  { %v1943_v24 = vpack.c.bf16 %v844_v21, %v842_v9  ;;  %v1321_v25 = vadd.f32 %v1320_v13, %v844_v21  ;;  %v1392_v26 = vmul.f32 %v844_v21, %v844_v21  ;;  %v1745_v9 = vld [vmem:[%s2912_s0 + $0x1a0] sm:$0xf] }
  0xbb   :  { %v1746_v14 = vor.u32 %v1908_v10, %v1745_v9 }
  0xbc   :  { %2095 = vst [vmem:[%s2913_s2 + $0x8] sm:$0xff] %v1943_v24   ;;  %v1455_v31 = vadd.f32 %v1454_v18, %v1392_v26  ;;  %v754_v6 = vpop.f32.mrf.mxu2 }
  0xbd   :  { %v923_v7 = vpop.f32.mrf.mxu3 }
  0xbe   :  { %v677_v34 = vpop.f32.mrf.mxu0  ;;  %v2499_v8 = vadd.f32 %v923_v7, %v754_v6 }
  0xbf   :  { %v846_v35 = vpop.f32.mrf.mxu1 }
  0xc0   :  { %v847_v37 = vadd.f32 %v846_v35, %v677_v34  ;;  %v2023_v16 = vpack.c.bf16 %v2499_v8, %v2497_v4 }
  0xc1   :  { %716 = vmatmul.bf16.gmra.mxu0 %v1618_v32  ;;  %796 = vmatmul.bf16.gmra.mxu2 %v1746_v14  ;;  %v1634_v32 = vor.u32 %v1880_v28, %v1633_v27  ;;  %v1912_v14 = vld [vmem:[%s2912_s0 + $0x1c4] sm:$0xf0] }
  0xc2   :  { %v1322_v44 = vadd.f32 %v1321_v25, %v847_v37  ;;  %v1393_v45 = vmul.f32 %v847_v37, %v847_v37  ;;  %885 = vmatmul.bf16.gmra.mxu1 %v1622_v33  ;;  %2111 = vst [vmem:[%s2913_s2 + $0x88] sm:$0xff] %v2023_v16   ;;  %965 = vmatmul.bf16.gmra.mxu3 %v1750_v17 }
  0xc3   :  { %v1638_v33 = vor.u32 %v1879_v29, %v1635_v30 }
  0xc4   :  { %v1456_v50 = vadd.f32 %v1455_v31, %v1393_v45  ;;  %v757_v22 = vpop.f32.mrf.mxu2  ;;  %v1909_v45 = vld [vmem:[%s2912_s0 + $0x1b4] sm:$0xf] }
  0xc5   :  { %v926_v23 = vpop.f32.mrf.mxu3 }
  0xc6   :  { %v679_v51 = vpop.f32.mrf.mxu0 }
  0xc7   :  { %v848_v52 = vpop.f32.mrf.mxu1 }
  0xc8   :  { %v849_v53 = vadd.f32 %v848_v52, %v679_v51  ;;  %v1758_v51 = vor.u32 %v1909_v45, %v1755_v49  ;;  %v1769_v49 = vld [vmem:[%s2912_s0 + $0x1d0] sm:$0xf] }
  0xca   :  { %v1948_v56 = vpack.c.bf16 %v849_v53, %v847_v37  ;;  %v1323_v57 = vadd.f32 %v1322_v44, %v849_v53  ;;  %v1394_v58 = vmul.f32 %v849_v53, %v849_v53  ;;  %v2533_v37 = vadd.f32 %v926_v23, %v757_v22  ;;  %v1910_v44 = vld [vmem:[%s2912_s0 + $0x1b4] sm:$0xf0] }
  0xcb   :  { %v1754_v48 = vor.u32 %v1910_v44, %v1753_v43 }
  0xcc   :  { %2096 = vst [vmem:[%s2913_s2 + $0x10] sm:$0xff] %v1948_v56   ;;  %v1457_v63 = vadd.f32 %v1456_v50, %v1394_v58  ;;  %v759_v39 = vpop.f32.mrf.mxu2 }
  0xcd   :  { %v928_v41 = vpop.f32.mrf.mxu3 }
  0xce   :  { %v682_v2 = vpop.f32.mrf.mxu0  ;;  %v2535_v42 = vadd.f32 %v928_v41, %v759_v39 }
  0xcf   :  { %v851_v3 = vpop.f32.mrf.mxu1 }
  0xd0   :  { %v852_v5 = vadd.f32 %v851_v3, %v682_v2  ;;  %v2028_v50 = vpack.c.bf16 %v2535_v42, %v2533_v37  ;;  %v1642_v2 = vor.u32 %v1882_v62, %v1641_v61 }
  0xd1   :  { %721 = vmatmul.bf16.gmra.mxu0 %v1626_v0  ;;  %801 = vmatmul.bf16.gmra.mxu2 %v1754_v48  ;;  %v1643_v0 = vld [vmem:[%s2912_s0 + $0xd8] sm:$0xf0] }
  0xd2   :  { %v1324_v12 = vadd.f32 %v1323_v57, %v852_v5  ;;  %v1395_v13 = vmul.f32 %v852_v5, %v852_v5  ;;  %890 = vmatmul.bf16.gmra.mxu1 %v1630_v1  ;;  %2112 = vst [vmem:[%s2913_s2 + $0x90] sm:$0xff] %v2028_v50   ;;  %970 = vmatmul.bf16.gmra.mxu3 %v1758_v51  ;;  %v1914_v50 = vld [vmem:[%s2912_s0 + $0x1d4] sm:$0xf0]  ;;  %v1913_v51 = vld [vmem:[%s2912_s0 + $0x1d4] sm:$0xf] }
  0xd4   :  { %v1458_v18 = vadd.f32 %v1457_v63, %v1395_v13  ;;  %v762_v56 = vpop.f32.mrf.mxu2  ;;  %v1881_v63 = vld [vmem:[%s2912_s0 + $0xd4] sm:$0xf]  ;;  %v1761_v13 = vld [vmem:[%s2912_s0 + $0x1c0] sm:$0xf] }
  0xd5   :  { %v931_v57 = vpop.f32.mrf.mxu3  ;;  %v1646_v3 = vor.u32 %v1881_v63, %v1643_v0 }
  0xd6   :  { %v684_v19 = vpop.f32.mrf.mxu0  ;;  %v2569_v7 = vadd.f32 %v931_v57, %v762_v56 }
  0xd7   :  { %v853_v20 = vpop.f32.mrf.mxu1 }
  0xd8   :  { %v854_v21 = vadd.f32 %v853_v20, %v684_v19  ;;  %v1763_v19 = vld [vmem:[%s2912_s0 + $0x1c8] sm:$0xf0] }
  0xda   :  { %v1953_v24 = vpack.c.bf16 %v854_v21, %v852_v5  ;;  %v1325_v25 = vadd.f32 %v1324_v12, %v854_v21  ;;  %v1396_v26 = vmul.f32 %v854_v21, %v854_v21  ;;  %v1766_v21 = vor.u32 %v1911_v15, %v1763_v19 }
  0xdc   :  { %2097 = vst [vmem:[%s2913_s2 + $0x18] sm:$0xff] %v1953_v24   ;;  %v1459_v31 = vadd.f32 %v1458_v18, %v1396_v26  ;;  %v764_v10 = vpop.f32.mrf.mxu2  ;;  %v1762_v18 = vor.u32 %v1912_v14, %v1761_v13 }
  0xdd   :  { %v933_v11 = vpop.f32.mrf.mxu3 }
  0xde   :  { %v687_v34 = vpop.f32.mrf.mxu0  ;;  %v2571_v12 = vadd.f32 %v933_v11, %v764_v10 }
  0xdf   :  { %v856_v35 = vpop.f32.mrf.mxu1 }
  0xe0   :  { %v857_v38 = vadd.f32 %v856_v35, %v687_v34  ;;  %v2033_v20 = vpack.c.bf16 %v2571_v12, %v2569_v7  ;;  %v1651_v34 = vld [vmem:[%s2912_s0 + $0xe8] sm:$0xf0] }
  0xe1   :  { %726 = vmatmul.bf16.gmra.mxu0 %v1634_v32  ;;  %806 = vmatmul.bf16.gmra.mxu2 %v1762_v18  ;;  %v1884_v32 = vld [vmem:[%s2912_s0 + $0xe4] sm:$0xf0] }
  0xe2   :  { %v1326_v46 = vadd.f32 %v1325_v25, %v857_v38  ;;  %v1397_v47 = vmul.f32 %v857_v38, %v857_v38  ;;  %895 = vmatmul.bf16.gmra.mxu1 %v1638_v33  ;;  %2113 = vst [vmem:[%s2913_s2 + $0x98] sm:$0xff] %v2033_v20   ;;  %975 = vmatmul.bf16.gmra.mxu3 %v1766_v21  ;;  %v1883_v33 = vld [vmem:[%s2912_s0 + $0xe4] sm:$0xf]  ;;  %v1777_v21 = vld [vmem:[%s2912_s0 + $0x1e0] sm:$0xf] }
  0xe3   :  { %v1654_v39 = vor.u32 %v1883_v33, %v1651_v34 }
  0xe4   :  { %v1460_v52 = vadd.f32 %v1459_v31, %v1397_v47  ;;  %v767_v26 = vpop.f32.mrf.mxu2  ;;  %v1649_v31 = vld [vmem:[%s2912_s0 + $0xe0] sm:$0xf] }
  0xe5   :  { %v936_v27 = vpop.f32.mrf.mxu3 }
  0xe6   :  { %v689_v53 = vpop.f32.mrf.mxu0  ;;  %v2605_v44 = vadd.f32 %v936_v27, %v767_v26  ;;  %v1779_v27 = vld [vmem:[%s2912_s0 + $0x1e8] sm:$0xf0] }
  0xe7   :  { %v858_v54 = vpop.f32.mrf.mxu1 }
  0xe8   :  { %v859_v55 = vadd.f32 %v858_v54, %v689_v53  ;;  %v1770_v54 = vor.u32 %v1914_v50, %v1769_v49 }
  0xea   :  { %v1958_v58 = vpack.c.bf16 %v859_v55, %v857_v38  ;;  %v1327_v59 = vadd.f32 %v1326_v46, %v859_v55  ;;  %v1398_v60 = vmul.f32 %v859_v55, %v859_v55  ;;  %v1650_v38 = vor.u32 %v1884_v32, %v1649_v31  ;;  %v1771_v55 = vld [vmem:[%s2912_s0 + $0x1d8] sm:$0xf0] }
  0xeb   :  { %v1774_v57 = vor.u32 %v1913_v51, %v1771_v55  ;;  %v1917_v55 = vld [vmem:[%s2912_s0 + $0x1f4] sm:$0xf] }
  0xec   :  { %2098 = vst [vmem:[%s2913_s2 + $0x20] sm:$0xff] %v1958_v58   ;;  %v1461_v1 = vadd.f32 %v1460_v52, %v1398_v60  ;;  %v769_v46 = vpop.f32.mrf.mxu2 }
  0xed   :  { %v938_v47 = vpop.f32.mrf.mxu3 }
  0xee   :  { %v692_v5 = vpop.f32.mrf.mxu0  ;;  %v2607_v48 = vadd.f32 %v938_v47, %v769_v46 }
  0xef   :  { %v861_v6 = vpop.f32.mrf.mxu1 }
  0xf0   :  { %v862_v9 = vadd.f32 %v861_v6, %v692_v5  ;;  %v2038_v56 = vpack.c.bf16 %v2607_v48, %v2605_v44  ;;  %v1886_v5 = vld [vmem:[%s2912_s0 + $0xf4] sm:$0xf0]  ;;  %v1885_v6 = vld [vmem:[%s2912_s0 + $0xf4] sm:$0xf] }
  0xf1   :  { %731 = vmatmul.bf16.gmra.mxu0 %v1642_v2  ;;  %811 = vmatmul.bf16.gmra.mxu2 %v1770_v54  ;;  %v1918_v54 = vld [vmem:[%s2912_s0 + $0x1f4] sm:$0xf0] }
  0xf2   :  { %v1328_v16 = vadd.f32 %v1327_v59, %v862_v9  ;;  %v1399_v17 = vmul.f32 %v862_v9, %v862_v9  ;;  %900 = vmatmul.bf16.gmra.mxu1 %v1646_v3  ;;  %2114 = vst [vmem:[%s2913_s2 + $0xa0] sm:$0xff] %v2038_v56   ;;  %980 = vmatmul.bf16.gmra.mxu3 %v1774_v57  ;;  %v1657_v3 = vld [vmem:[%s2912_s0 + $0xf0] sm:$0xf] }
  0xf3   :  { %v1658_v11 = vor.u32 %v1886_v5, %v1657_v3 }
  0xf4   :  { %v1462_v22 = vadd.f32 %v1461_v1, %v1399_v17  ;;  %v772_v62 = vpop.f32.mrf.mxu2 }
  0xf5   :  { %v941_v63 = vpop.f32.mrf.mxu3 }
  0xf6   :  { %v694_v23 = vpop.f32.mrf.mxu0 }
  0xf7   :  { %v863_v24 = vpop.f32.mrf.mxu1 }
  0xf8   :  { %v864_v25 = vadd.f32 %v863_v24, %v694_v23  ;;  %v1915_v23 = vld [vmem:[%s2912_s0 + $0x1e4] sm:$0xf] }
  0xfa   :  { %v1963_v28 = vpack.c.bf16 %v864_v25, %v862_v9  ;;  %v1329_v29 = vadd.f32 %v1328_v16, %v864_v25  ;;  %v1400_v30 = vmul.f32 %v864_v25, %v864_v25  ;;  %v1659_v9 = vld [vmem:[%s2912_s0 + $0xf8] sm:$0xf0]  ;;  %v2641_v16 = vadd.f32 %v941_v63, %v772_v62 }
  0xfb   :  { %v1662_v13 = vor.u32 %v1885_v6, %v1659_v9 }
  0xfc   :  { %2099 = vst [vmem:[%s2913_s2 + $0x28] sm:$0xff] %v1963_v28   ;;  %v1463_v35 = vadd.f32 %v1462_v22, %v1400_v30  ;;  %v774_v18 = vpop.f32.mrf.mxu2  ;;  %v1916_v22 = vld [vmem:[%s2912_s0 + $0x1e4] sm:$0xf0] }
  0xfd   :  { %v943_v19 = vpop.f32.mrf.mxu3  ;;  %v1778_v26 = vor.u32 %v1916_v22, %v1777_v21 }
  0xfe   :  { %v697_v41 = vpop.f32.mrf.mxu0  ;;  %v2643_v20 = vadd.f32 %v943_v19, %v774_v18 }
  0xff   :  { %v866_v43 = vpop.f32.mrf.mxu1 }
 0x100   :  { %v867_v45 = vadd.f32 %v866_v43, %v697_v41  ;;  %v2043_v28 = vpack.c.bf16 %v2643_v20, %v2641_v16 }
 0x101   :  { %736 = vmatmul.bf16.gmra.mxu0 %v1650_v38  ;;  %816 = vmatmul.bf16.gmra.mxu2 %v1778_v26 }
 0x102   :  { %v1330_v52 = vadd.f32 %v1329_v29, %v867_v45  ;;  %v1401_v53 = vmul.f32 %v867_v45, %v867_v45  ;;  %905 = vmatmul.bf16.gmra.mxu1 %v1654_v39  ;;  %v1782_v29 = vor.u32 %v1915_v23, %v1779_v27  ;;  %2115 = vst [vmem:[%s2913_s2 + $0xa8] sm:$0xff] %v2043_v28  }
 0x104   :  { %v1464_v58 = vadd.f32 %v1463_v35, %v1401_v53  ;;  %985 = vmatmul.bf16.gmra.mxu3 %v1782_v29  ;;  %v777_v34 = vpop.f32.mrf.mxu2  ;;  %v1785_v53 = vld [vmem:[%s2912_s0 + $0x1f0] sm:$0xf] }
 0x105   :  { %v946_v35 = vpop.f32.mrf.mxu3 }
 0x106   :  { %v699_v59 = vpop.f32.mrf.mxu0  ;;  %v2665_v47 = vadd.f32 %v946_v35, %v777_v34 }
 0x107   :  { %v868_v60 = vpop.f32.mrf.mxu1 }
 0x108   :  { %v869_v61 = vadd.f32 %v868_v60, %v699_v59  ;;  %v1787_v59 = vld [vmem:[%s2912_s0 + $0x1f8] sm:$0xf0] }
 0x10a   :  { %v1968_v0 = vpack.c.bf16 %v869_v61, %v867_v45  ;;  %v1331_v1 = vadd.f32 %v1330_v52, %v869_v61  ;;  %v1402_v2 = vmul.f32 %v869_v61, %v869_v61  ;;  %v1790_v61 = vor.u32 %v1917_v55, %v1787_v59 }
 0x10c   :  { %2100 = vst [vmem:[%s2913_s2 + $0x30] sm:$0xff] %v1968_v0   ;;  %v1465_v10 = vadd.f32 %v1464_v58, %v1402_v2  ;;  %v779_v50 = vpop.f32.mrf.mxu2  ;;  %v1786_v58 = vor.u32 %v1918_v54, %v1785_v53 }
 0x10d   :  { %v948_v51 = vpop.f32.mrf.mxu3 }
 0x10e   :  { %v702_v14 = vpop.f32.mrf.mxu0  ;;  %v2667_v52 = vadd.f32 %v948_v51, %v779_v50 }
 0x10f   :  { %v871_v15 = vpop.f32.mrf.mxu1 }
 0x110   :  { %v872_v17 = vadd.f32 %v871_v15, %v702_v14  ;;  %v2048_v60 = vpack.c.bf16 %v2667_v52, %v2665_v47 }
 0x111   :  { %741 = vmatmul.bf16.gmra.mxu0 %v1658_v11  ;;  %821 = vmatmul.bf16.gmra.mxu2 %v1786_v58 }
 0x112   :  { %v1332_v24 = vadd.f32 %v1331_v1, %v872_v17  ;;  %v1403_v25 = vmul.f32 %v872_v17, %v872_v17  ;;  %910 = vmatmul.bf16.gmra.mxu1 %v1662_v13  ;;  %2116 = vst [vmem:[%s2913_s2 + $0xb0] sm:$0xff] %v2048_v60  }
 0x114   :  { %v1466_v30 = vadd.f32 %v1465_v10, %v1403_v25  ;;  %990 = vmatmul.bf16.gmra.mxu3 %v1790_v61  ;;  %v782_v2 = vpop.f32.mrf.mxu2 }
 0x115   :  { %v951_v3 = vpop.f32.mrf.mxu3 }
 0x116   :  { %v704_v31 = vpop.f32.mrf.mxu0  ;;  %v2689_v14 = vadd.f32 %v951_v3, %v782_v2 }
 0x117   :  { %v873_v32 = vpop.f32.mrf.mxu1 }
 0x118   :  { %v874_v33 = vadd.f32 %v873_v32, %v704_v31 }
 0x11a   :  { %v1973_v38 = vpack.c.bf16 %v874_v33, %v872_v17  ;;  %v1333_v39 = vadd.f32 %v1332_v24, %v874_v33  ;;  %v1404_v41 = vmul.f32 %v874_v33, %v874_v33 }
 0x11c   :  { %2101 = vst [vmem:[%s2913_s2 + $0x38] sm:$0xff] %v1973_v38   ;;  %v1467_v43 = vadd.f32 %v1466_v30, %v1404_v41  ;;  %v784_v17 = vpop.f32.mrf.mxu2 }
 0x11d   :  { %v953_v18 = vpop.f32.mrf.mxu3 }
 0x11e   :  { %v707_v45 = vpop.f32.mrf.mxu0  ;;  %v2691_v19 = vadd.f32 %v953_v18, %v784_v17 }
 0x11f   :  { %v876_v46 = vpop.f32.mrf.mxu1 }
 0x120   :  { %v877_v49 = vadd.f32 %v876_v46, %v707_v45  ;;  %v2053_v23 = vpack.c.bf16 %v2691_v19, %v2689_v14 }
 0x122   :  { %v1334_v56 = vadd.f32 %v1333_v39, %v877_v49  ;;  %v1405_v57 = vmul.f32 %v877_v49, %v877_v49  ;;  %2117 = vst [vmem:[%s2913_s2 + $0xb8] sm:$0xff] %v2053_v23  }
 0x124   :  { %v1468_v62 = vadd.f32 %v1467_v43, %v1405_v57  ;;  %v787_v28 = vpop.f32.mrf.mxu2 }
 0x125   :  { %v956_v29 = vpop.f32.mrf.mxu3 }
 0x126   :  { %v709_v63 = vpop.f32.mrf.mxu0  ;;  %v2705_v38 = vadd.f32 %v956_v29, %v787_v28 }
 0x127   :  { %v878_v0 = vpop.f32.mrf.mxu1 }
 0x128   :  { %v879_v1 = vadd.f32 %v878_v0, %v709_v63 }
 0x12a   :  { %v1978_v5 = vpack.c.bf16 %v879_v1, %v877_v49  ;;  %v1335_v6 = vadd.f32 %v1334_v56, %v879_v1  ;;  %v1406_v9 = vmul.f32 %v879_v1, %v879_v1 }
 0x12c   :  { %2102 = vst [vmem:[%s2913_s2 + $0x40] sm:$0xff] %v1978_v5   ;;  %v1469_v10 = vadd.f32 %v1468_v62, %v1406_v9  ;;  %v789_v39 = vpop.f32.mrf.mxu2 }
 0x12d   :  { %v958_v41 = vpop.f32.mrf.mxu3 }
 0x12e   :  { %v712_v11 = vpop.f32.mrf.mxu0  ;;  %v2707_v43 = vadd.f32 %v958_v41, %v789_v39 }
 0x12f   :  { %v881_v13 = vpop.f32.mrf.mxu1 }
 0x130   :  { %v882_v15 = vadd.f32 %v881_v13, %v712_v11  ;;  %v2058_v45 = vpack.c.bf16 %v2707_v43, %v2705_v38 }
 0x132   :  { %v1336_v21 = vadd.f32 %v1335_v6, %v882_v15  ;;  %v1407_v22 = vmul.f32 %v882_v15, %v882_v15  ;;  %2118 = vst [vmem:[%s2913_s2 + $0xc0] sm:$0xff] %v2058_v45  }
 0x134   :  { %v1470_v24 = vadd.f32 %v1469_v10, %v1407_v22  ;;  %v792_v53 = vpop.f32.mrf.mxu2 }
 0x135   :  { %v961_v54 = vpop.f32.mrf.mxu3 }
 0x136   :  { %v714_v25 = vpop.f32.mrf.mxu0  ;;  %v2723_v58 = vadd.f32 %v961_v54, %v792_v53 }
 0x137   :  { %v883_v26 = vpop.f32.mrf.mxu1 }
 0x138   :  { %v884_v27 = vadd.f32 %v883_v26, %v714_v25 }
 0x13a   :  { %v1983_v30 = vpack.c.bf16 %v884_v27, %v882_v15  ;;  %v2698_v31 = vadd.f32 %v1336_v21, %v884_v27  ;;  %v1408_v32 = vmul.f32 %v884_v27, %v884_v27 }
 0x13c   :  { %2103 = vst [vmem:[%s2913_s2 + $0x48] sm:$0xff] %v1983_v30   ;;  %v2703_v33 = vadd.f32 %v1470_v24, %v1408_v32  ;;  %v794_v59 = vpop.f32.mrf.mxu2 }
 0x13d   :  { %v963_v60 = vpop.f32.mrf.mxu3 }
 0x13e   :  { %v717_v34 = vpop.f32.mrf.mxu0  ;;  %v2725_v61 = vadd.f32 %v963_v60, %v794_v59 }
 0x13f   :  { %v886_v35 = vpop.f32.mrf.mxu1 }
 0x140   :  { %v2714_v50 = vadd.f32 %v886_v35, %v717_v34  ;;  %v2063_v62 = vpack.c.bf16 %v2725_v61, %v2723_v58 }
 0x142   :  { %2119 = vst [vmem:[%s2913_s2 + $0xc8] sm:$0xff] %v2063_v62  }
 0x144   :  { %v797_v3 = vpop.f32.mrf.mxu2 }
 0x145   :  { %v966_v5 = vpop.f32.mrf.mxu3 }
 0x146   :  { %v719_v46 = vpop.f32.mrf.mxu0  ;;  %v2735_v11 = vadd.f32 %v966_v5, %v797_v3 }
 0x147   :  { %v888_v49 = vpop.f32.mrf.mxu1 }
 0x148   :  { %v2716_v51 = vadd.f32 %v888_v49, %v719_v46 }
 0x14a   :  { %v1988_v55 = vpack.c.bf16 %v2716_v51, %v2714_v50  ;;  %v1410_v3 = vmul.f32 %v2716_v51, %v2716_v51 }
 0x14c   :  { %2104 = vst [vmem:[%s2913_s2 + $0x50] sm:$0xff] %v1988_v55   ;;  %v799_v13 = vpop.f32.mrf.mxu2 }
 0x14d   :  { %v968_v15 = vpop.f32.mrf.mxu3 }
 0x14e   :  { %v722_v56 = vpop.f32.mrf.mxu0  ;;  %v2737_v17 = vadd.f32 %v968_v15, %v799_v13 }
 0x14f   :  { %v891_v57 = vpop.f32.mrf.mxu1 }
 0x150   :  { %v892_v1 = vadd.f32 %v891_v57, %v722_v56  ;;  %v2068_v18 = vpack.c.bf16 %v2737_v17, %v2735_v11 }
 0x152   :  { %2120 = vst [vmem:[%s2913_s2 + $0xd0] sm:$0xff] %v2068_v18   ;;  %v1411_v13 = vmul.f32 %v892_v1, %v892_v1 }
 0x154   :  { %v802_v25 = vpop.f32.mrf.mxu2 }
 0x155   :  { %v971_v26 = vpop.f32.mrf.mxu3 }
 0x156   :  { %v724_v63 = vpop.f32.mrf.mxu0  ;;  %v2747_v30 = vadd.f32 %v971_v26, %v802_v25 }
 0x157   :  { %v893_v0 = vpop.f32.mrf.mxu1 }
 0x158   :  { %v894_v2 = vadd.f32 %v893_v0, %v724_v63  ;;  %v1409_v63 = vmul.f32 %v2714_v50, %v2714_v50 }
 0x15a   :  { %v1993_v6 = vpack.c.bf16 %v894_v2, %v892_v1  ;;  %v1412_v25 = vmul.f32 %v894_v2, %v894_v2 }
 0x15c   :  { %2105 = vst [vmem:[%s2913_s2 + $0x58] sm:$0xff] %v1993_v6   ;;  %v804_v32 = vpop.f32.mrf.mxu2  ;;  %v1338_v6 = vadd.f32 %v2698_v31, %v2714_v50 }
 0x15d   :  { %v973_v34 = vpop.f32.mrf.mxu3 }
 0x15e   :  { %v727_v9 = vpop.f32.mrf.mxu0  ;;  %v2749_v35 = vadd.f32 %v973_v34, %v804_v32 }
 0x15f   :  { %v896_v10 = vpop.f32.mrf.mxu1 }
 0x160   :  { %v897_v23 = vadd.f32 %v896_v10, %v727_v9  ;;  %v2073_v39 = vpack.c.bf16 %v2749_v35, %v2747_v30  ;;  %v1472_v9 = vadd.f32 %v2703_v33, %v1409_v63  ;;  %v1339_v10 = vadd.f32 %v1338_v6, %v2716_v51 }
 0x162   :  { %2121 = vst [vmem:[%s2913_s2 + $0xd8] sm:$0xff] %v2073_v39   ;;  %v1473_v15 = vadd.f32 %v1472_v9, %v1410_v3  ;;  %v1413_v50 = vmul.f32 %v897_v23, %v897_v23 }
 0x164   :  { %v807_v53 = vpop.f32.mrf.mxu2  ;;  %v1474_v32 = vadd.f32 %v1473_v15, %v1411_v13 }
 0x165   :  { %v976_v54 = vpop.f32.mrf.mxu3 }
 0x166   :  { %v729_v21 = vpop.f32.mrf.mxu0  ;;  %v2759_v59 = vadd.f32 %v976_v54, %v807_v53  ;;  %v1475_v34 = vadd.f32 %v1474_v32, %v1412_v25 }
 0x167   :  { %v898_v22 = vpop.f32.mrf.mxu1 }
 0x168   :  { %v899_v24 = vadd.f32 %v898_v22, %v729_v21  ;;  %v1340_v22 = vadd.f32 %v1339_v10, %v892_v1  ;;  %v1476_v51 = vadd.f32 %v1475_v34, %v1413_v50 }
 0x16a   :  { %v1998_v27 = vpack.c.bf16 %v899_v24, %v897_v23  ;;  %v1341_v31 = vadd.f32 %v1340_v22, %v894_v2 }
 0x16c   :  { %2106 = vst [vmem:[%s2913_s2 + $0x60] sm:$0xff] %v1998_v27   ;;  %v809_v60 = vpop.f32.mrf.mxu2  ;;  %v1342_v39 = vadd.f32 %v1341_v31, %v897_v23 }
 0x16d   :  { %v978_v62 = vpop.f32.mrf.mxu3 }
 0x16e   :  { %v732_v28 = vpop.f32.mrf.mxu0  ;;  %v2763_v0 = vadd.f32 %v978_v62, %v809_v60 }
 0x16f   :  { %v901_v29 = vpop.f32.mrf.mxu1 }
 0x170   :  { %v902_v46 = vadd.f32 %v901_v29, %v732_v28  ;;  %v2078_v5 = vpack.c.bf16 %v2763_v0, %v2759_v59 }
 0x172   :  { %2122 = vst [vmem:[%s2913_s2 + $0xe0] sm:$0xff] %v2078_v5   ;;  %v1415_v53 = vmul.f32 %v902_v46, %v902_v46 }
 0x174   :  { %v812_v28 = vpop.f32.mrf.mxu2 }
 0x175   :  { %v981_v29 = vpop.f32.mrf.mxu3 }
 0x176   :  { %v734_v41 = vpop.f32.mrf.mxu0  ;;  %v2779_v60 = vadd.f32 %v981_v29, %v812_v28 }
 0x177   :  { %v903_v45 = vpop.f32.mrf.mxu1 }
 0x178   :  { %v904_v49 = vadd.f32 %v903_v45, %v734_v41  ;;  %v1414_v41 = vmul.f32 %v899_v24, %v899_v24  ;;  %v1343_v45 = vadd.f32 %v1342_v39, %v899_v24 }
 0x17a   :  { %v2003_v55 = vpack.c.bf16 %v904_v49, %v902_v46 }
 0x17c   :  { %2107 = vst [vmem:[%s2913_s2 + $0x68] sm:$0xff] %v2003_v55   ;;  %v1477_v55 = vadd.f32 %v1476_v51, %v1414_v41  ;;  %v814_v2 = vpop.f32.mrf.mxu2  ;;  %v1422_v41 = vmul.f32 %v2463_v40, %v2463_v40 }
 0x17d   :  { %v983_v62 = vpop.f32.mrf.mxu3 }
 0x17e   :  { %v737_v56 = vpop.f32.mrf.mxu0  ;;  %v2781_v63 = vadd.f32 %v983_v62, %v814_v2  ;;  %v1478_v23 = vadd.f32 %v1477_v55, %v1415_v53  ;;  %v1423_v53 = vmul.f32 %v2497_v4, %v2497_v4 }
 0x17f   :  { %v906_v57 = vpop.f32.mrf.mxu1 }
 0x180   :  { %v907_v26 = vadd.f32 %v906_v57, %v737_v56  ;;  %v1344_v56 = vadd.f32 %v1343_v45, %v902_v46  ;;  %v1416_v57 = vmul.f32 %v904_v49, %v904_v49  ;;  %v2083_v9 = vpack.c.bf16 %v2781_v63, %v2779_v60 }
 0x182   :  { %v1345_v3 = vadd.f32 %v1344_v56, %v904_v49  ;;  %v1417_v5 = vmul.f32 %v907_v26, %v907_v26  ;;  %v1479_v24 = vadd.f32 %v1478_v23, %v1416_v57  ;;  %2123 = vst [vmem:[%s2913_s2 + $0xe8] sm:$0xff] %v2083_v9  }
 0x184   :  { %v1346_v10 = vadd.f32 %v1345_v3, %v907_v26  ;;  %v1480_v46 = vadd.f32 %v1479_v24, %v1417_v5  ;;  %v817_v29 = vpop.f32.mrf.mxu2  ;;  %v1425_v3 = vmul.f32 %v2533_v37, %v2533_v37  ;;  %v1427_v24 = vmul.f32 %v2569_v7, %v2569_v7 }
 0x186   :  { %v739_v18 = vpop.f32.mrf.mxu0 }
 0x187   :  { %v908_v21 = vpop.f32.mrf.mxu1  ;;  %v986_v32 = vpop.f32.mrf.mxu3 }
 0x188   :  { %v909_v27 = vadd.f32 %v908_v21, %v739_v18  ;;  %v2800_v55 = vadd.f32 %v986_v32, %v817_v29  ;;  %v1431_v29 = vmul.f32 %v2641_v16, %v2641_v16 }
 0x18a   :  { %v2008_v33 = vpack.c.bf16 %v909_v27, %v907_v26  ;;  %v1418_v13 = vmul.f32 %v909_v27, %v909_v27  ;;  %v1347_v15 = vadd.f32 %v1346_v10, %v909_v27  ;;  %v1421_v26 = vmul.f32 %v2461_v36, %v2461_v36 }
 0x18c   :  { %2108 = vst [vmem:[%s2913_s2 + $0x70] sm:$0xff] %v2008_v33   ;;  %v1481_v25 = vadd.f32 %v1480_v46, %v1418_v13  ;;  %v819_v56 = vpop.f32.mrf.mxu2 }
 0x18e   :  { %v742_v1 = vpop.f32.mrf.mxu0 }
 0x18f   :  { %v911_v54 = vpop.f32.mrf.mxu1  ;;  %v988_v57 = vpop.f32.mrf.mxu3 }
 0x190   :  { %v912_v6 = vadd.f32 %v911_v54, %v742_v1  ;;  %v2802_v2 = vadd.f32 %v988_v57, %v819_v56  ;;  %v1436_v56 = vmul.f32 %v2691_v19, %v2691_v19 }
 0x192   :  { %v1419_v18 = vmul.f32 %v912_v6, %v912_v6  ;;  %v1348_v28 = vadd.f32 %v1347_v15, %v912_v6 }
 0x194   :  { %v1482_v31 = vadd.f32 %v1481_v25, %v1419_v18  ;;  %v822_v46 = vpop.f32.mrf.mxu2 }
 0x196   :  { %v744_v21 = vpop.f32.mrf.mxu0 }
 0x197   :  { %v913_v22 = vpop.f32.mrf.mxu1  ;;  %v991_v15 = vpop.f32.mrf.mxu3 }
 0x198   :  { %v914_v49 = vadd.f32 %v913_v22, %v744_v21  ;;  %v1429_v22 = vmul.f32 %v2605_v44, %v2605_v44 }
 0x19a   :  { %v2013_v50 = vpack.c.bf16 %v914_v49, %v912_v6  ;;  %v1349_v33 = vadd.f32 %v1348_v28, %v914_v49  ;;  %v1420_v34 = vmul.f32 %v914_v49, %v914_v49  ;;  %v1426_v6 = vmul.f32 %v2535_v42, %v2535_v42 }
 0x19b   :  { %v1430_v28 = vmul.f32 %v2607_v48, %v2607_v48 }
 0x19c   :  { %2109 = vst [vmem:[%s2913_s2 + $0x78] sm:$0xff] %v2013_v50   ;;  %v1350_v27 = vadd.f32 %v1349_v33, %v2461_v36  ;;  %v1483_v39 = vadd.f32 %v1482_v31, %v1420_v34  ;;  %v1424_v36 = vmul.f32 %v2499_v8, %v2499_v8  ;;  %v824_v50 = vpop.f32.mrf.mxu2 }
 0x19e   :  { %v1351_v51 = vadd.f32 %v1350_v27, %v2463_v40  ;;  %v1484_v45 = vadd.f32 %v1483_v39, %v1421_v26  ;;  %v2088_v40 = vpack.c.bf16 %v2802_v2, %v2800_v55  ;;  %v1433_v39 = vmul.f32 %v2665_v47, %v2665_v47 }
 0x19f   :  { %v993_v33 = vpop.f32.mrf.mxu3 }
 0x1a0   :  { %v1352_v1 = vadd.f32 %v1351_v51, %v2497_v4  ;;  %v1485_v54 = vadd.f32 %v1484_v45, %v1422_v41  ;;  %2124 = vst [vmem:[%s2913_s2 + $0xf0] sm:$0xff] %v2088_v40   ;;  %v2835_v34 = vadd.f32 %v993_v33, %v824_v50  ;;  %v1434_v51 = vmul.f32 %v2667_v52, %v2667_v52 }
 0x1a1   :  { %v1450_v33 = vmul.f32 %v2802_v2, %v2802_v2 }
 0x1a2   :  { %v1353_v62 = vadd.f32 %v1352_v1, %v2499_v8  ;;  %v1486_v23 = vadd.f32 %v1485_v54, %v1423_v53  ;;  %v1435_v53 = vmul.f32 %v2689_v14, %v2689_v14 }
 0x1a4   :  { %v1354_v4 = vadd.f32 %v1353_v62, %v2533_v37  ;;  %v1487_v5 = vadd.f32 %v1486_v23, %v1424_v36  ;;  %v1428_v37 = vmul.f32 %v2571_v12, %v2571_v12  ;;  %v1437_v36 = vmul.f32 %v2705_v38, %v2705_v38 }
 0x1a6   :  { %v1355_v9 = vadd.f32 %v1354_v4, %v2535_v42  ;;  %v1488_v8 = vadd.f32 %v1487_v5, %v1425_v3 }
 0x1a8   :  { %v1356_v10 = vadd.f32 %v1355_v9, %v2569_v7  ;;  %v1489_v13 = vadd.f32 %v1488_v8, %v1426_v6 }
 0x1aa   :  { %v1357_v18 = vadd.f32 %v1356_v10, %v2571_v12  ;;  %v1490_v21 = vadd.f32 %v1489_v13, %v1427_v24  ;;  %v2833_v12 = vadd.f32 %v991_v15, %v822_v46 }
 0x1ac   :  { %v1358_v42 = vadd.f32 %v1357_v18, %v2605_v44  ;;  %v1491_v25 = vadd.f32 %v1490_v21, %v1428_v37  ;;  %v1432_v44 = vmul.f32 %v2643_v20, %v2643_v20  ;;  %v1445_v21 = vmul.f32 %v2759_v59, %v2759_v59 }
 0x1ae   :  { %v1359_v7 = vadd.f32 %v1358_v42, %v2607_v48  ;;  %v1492_v49 = vadd.f32 %v1491_v25, %v1429_v22  ;;  %v2093_v48 = vpack.c.bf16 %v2835_v34, %v2833_v12  ;;  %v1446_v25 = vmul.f32 %v2763_v0, %v2763_v0 }
 0x1b0   :  { %v1360_v32 = vadd.f32 %v1359_v7, %v2641_v16  ;;  %v1493_v31 = vadd.f32 %v1492_v49, %v1430_v28  ;;  %2125 = vst [vmem:[%s2913_s2 + $0xf8] sm:$0xff] %v2093_v48   ;;  %v1447_v7 = vmul.f32 %v2779_v60, %v2779_v60  ;;  %v1452_v48 = vmul.f32 %v2835_v34, %v2835_v34 }
 0x1b2   :  { %v1361_v26 = vadd.f32 %v1360_v32, %v2643_v20  ;;  %v1494_v27 = vadd.f32 %v1493_v31, %v1431_v29  ;;  %v1448_v29 = vmul.f32 %v2781_v63, %v2781_v63  ;;  %v1449_v31 = vmul.f32 %v2800_v55, %v2800_v55 }
 0x1b4   :  { %v1495_v16 = vadd.f32 %v1494_v27, %v1432_v44  ;;  %v1362_v41 = vadd.f32 %v1361_v26, %v2665_v47  ;;  %v1451_v26 = vmul.f32 %v2833_v12, %v2833_v12 }
 0x1b6   :  { %v1363_v45 = vadd.f32 %v1362_v41, %v2667_v52  ;;  %v1496_v20 = vadd.f32 %v1495_v16, %v1433_v39  ;;  %v1438_v52 = vmul.f32 %v2707_v43, %v2707_v43 }
 0x1b8   :  { %v1364_v1 = vadd.f32 %v1363_v45, %v2689_v14  ;;  %v1497_v54 = vadd.f32 %v1496_v20, %v1434_v51  ;;  %v1439_v14 = vmul.f32 %v2723_v58, %v2723_v58 }
 0x1ba   :  { %v1365_v47 = vadd.f32 %v1364_v1, %v2691_v19  ;;  %v1498_v57 = vadd.f32 %v1497_v54, %v1435_v53  ;;  %v1440_v19 = vmul.f32 %v2725_v61, %v2725_v61 }
 0x1bc   :  { %v1366_v62 = vadd.f32 %v1365_v47, %v2705_v38  ;;  %v1499_v23 = vadd.f32 %v1498_v57, %v1436_v56  ;;  %v1441_v38 = vmul.f32 %v2735_v11, %v2735_v11 }
 0x1be   :  { %v1367_v40 = vadd.f32 %v1366_v62, %v2707_v43  ;;  %v1500_v3 = vadd.f32 %v1499_v23, %v1437_v36  ;;  %v1442_v43 = vmul.f32 %v2737_v17, %v2737_v17 }
 0x1c0   :  { %v1368_v4 = vadd.f32 %v1367_v40, %v2723_v58  ;;  %v1501_v5 = vadd.f32 %v1500_v3, %v1438_v52  ;;  %v1443_v58 = vmul.f32 %v2747_v30, %v2747_v30 }
 0x1c2   :  { %v1369_v6 = vadd.f32 %v1368_v4, %v2725_v61  ;;  %v1502_v9 = vadd.f32 %v1501_v5, %v1439_v14  ;;  %v1444_v61 = vmul.f32 %v2749_v35, %v2749_v35 }
 0x1c4   :  { %v1370_v8 = vadd.f32 %v1369_v6, %v2735_v11  ;;  %v1503_v24 = vadd.f32 %v1502_v9, %v1440_v19 }
 0x1c6   :  { %v1371_v10 = vadd.f32 %v1370_v8, %v2737_v17  ;;  %v1504_v13 = vadd.f32 %v1503_v24, %v1441_v38 }
 0x1c8   :  { %v1372_v46 = vadd.f32 %v1371_v10, %v2747_v30  ;;  %v1505_v15 = vadd.f32 %v1504_v13, %v1442_v43 }
 0x1ca   :  { %v1373_v37 = vadd.f32 %v1372_v46, %v2749_v35  ;;  %v1506_v18 = vadd.f32 %v1505_v15, %v1443_v58 }
 0x1cc   :  { %v1374_v11 = vadd.f32 %v1373_v37, %v2759_v59  ;;  %v1507_v22 = vadd.f32 %v1506_v18, %v1444_v61 }
 0x1ce   :  { %v1508_v17 = vadd.f32 %v1507_v22, %v1445_v21  ;;  %v1375_v42 = vadd.f32 %v1374_v11, %v2763_v0 }
 0x1d0   :  { %v1509_v30 = vadd.f32 %v1508_v17, %v1446_v25  ;;  %v1376_v28 = vadd.f32 %v1375_v42, %v2779_v60 }
 0x1d2   :  { %v1510_v35 = vadd.f32 %v1509_v30, %v1447_v7  ;;  %v1377_v49 = vadd.f32 %v1376_v28, %v2781_v63 }
 0x1d4   :  { %v1511_v59 = vadd.f32 %v1510_v35, %v1448_v29  ;;  %v1378_v32 = vadd.f32 %v1377_v49, %v2800_v55 }
 0x1d6   :  { %v1512_v50 = vadd.f32 %v1511_v59, %v1449_v31  ;;  %v1379_v0 = vadd.f32 %v1378_v32, %v2802_v2 }
 0x1d8   :  { %v1513_v44 = vadd.f32 %v1512_v50, %v1450_v33  ;;  %v1380_v60 = vadd.f32 %v1379_v0, %v2833_v12 }
 0x1da   :  { %v1514_v27 = vadd.f32 %v1513_v44, %v1451_v26  ;;  %v1381_v63 = vadd.f32 %v1380_v60, %v2835_v34 }
 0x1dc   :  { %v1382_v39 = vrot.slane %v1381_v63, 4  ;;  %v1515_v55 = vadd.f32 %v1514_v27, %v1452_v48 }
 0x1de   :  { %v1383_v16 = vadd.f32 %v1382_v39, %v1381_v63  ;;  %v1516_v41 = vrot.slane %v1515_v55, 4 }
 0x1e0   :  { %v1384_v51 = vrot.slane %v1383_v16, 2  ;;  %v1517_v45 = vadd.f32 %v1516_v41, %v1515_v55 }
 0x1e2   :  { %v1385_v20 = vadd.f32 %v1384_v51, %v1383_v16  ;;  %v1518_v2 = vrot.slane %v1517_v45, 2 }
 0x1e4   :  { %v1386_v53 = vrot.slane %v1385_v20, 1  ;;  %v1519_v1 = vadd.f32 %v1518_v2, %v1517_v45 }
 0x1e6   :  { %v1387_v54 = vadd.f32 %v1386_v53, %v1385_v20  ;;  %v1520_v56 = vrot.slane %v1519_v1, 1 }
 0x1e8   :  { %1388 = vst [vmem:[%s2914_s3] sm:$0x1] %v1387_v54  ;;  %v1521_v12 = vadd.f32 %v1520_v56, %v1519_v1 }
 0x1ea   :  { %1522 = vst [vmem:[%s2915_s4] sm:$0x1] %v1521_v12 }

</bundles_post_ra>
